<compile_context>
chip_gen: v6e
topology: v6e:2x2x1
jax: 0.10.0
libtpu: 0.0.40
codegen_flags: <defaults>
</compile_context>

<pallas_src>
from functools import partial

import jax
import jax.numpy as jnp
from jax.experimental import pallas as pl
from jax.experimental.pallas import tpu as pltpu


def _round_up(x, m):
    return ((x + m - 1) // m) * m


# 48 MiB fits v7x's 64 MiB-per-TC VMEM with headroom, is far below v5e/v6e's
# 128 MiB, and covers tm=2048 x D=1536 working sets — one value, all gens.
_VMEM_LIMIT_BYTES = 48 * 1024 * 1024


def _patch_proj_kernel(x_ref, w_ref, b_ref, o_ref):
    # x_ref: (tm, K) bf16 patch rows; w_ref: (K, D) bf16 (resident);
    # b_ref: (1, D) f32 (resident); o_ref: (tm, D) out_dtype.
    # One MXU matmul with f32 accumulation, f32 bias add, downcast on store.
    acc = jnp.dot(x_ref[...], w_ref[...], preferred_element_type=jnp.float32)
    o_ref[...] = (acc + b_ref[...]).astype(o_ref.dtype)


def _pick_tm(M, K, D, out_itemsize, tm_target):
    """Largest 8-aligned M tile <= tm_target whose per-step working set
    (double-buffered activation/output blocks; resident weight/bias counted
    double-buffered as worst case) fits the VMEM budget with headroom."""
    tm = min(_round_up(tm_target, 8), _round_up(M, 8))

    def working_set(t):
        act = 2 * t * K * 2                 # bf16 activation block, x2 buffers
        out = 2 * t * D * out_itemsize      # output block, x2 buffers
        wgt = 2 * K * D * 2                 # bf16 weight (worst case x2)
        bia = 2 * D * 4                     # f32 bias (worst case x2)
        return act + out + wgt + bia

    while tm > 8 and working_set(tm) > int(0.8 * _VMEM_LIMIT_BYTES):
        tm = _round_up(max(8, tm // 2), 8)
    return tm


@partial(jax.jit, static_argnames=("patch_size", "out_dtype", "tm_target"))
def patch_embed_forward(x, weight, bias, patch_size, *,
                        out_dtype=jnp.bfloat16, tm_target=1024):
    """DINOv2 PatchEmbed forward (flatten_embedding=True, norm=Identity).

    x: (B, C, H, W) NCHW float.  weight: (D, C, pH, pW).  bias: (D,).
    Returns (B, N, D), N = (H//pH)*(W//pW), in `out_dtype` (bf16 by default;
    accumulation and bias add are f32 inside the kernel).
    """
    B, C, H, W = x.shape
    pH, pW = patch_size
    assert H % pH == 0, f"H={H} not a multiple of patch height {pH}"
    assert W % pW == 0, f"W={W} not a multiple of patch width {pW}"
    Hp, Wp = H // pH, W // pW
    D = weight.shape[0]
    K = C * pH * pW
    N = Hp * Wp
    M = B * N

    # Patch extraction + per-patch flatten (channel-major, matching the
    # PyTorch (D, C, pH, pW) weight layout), with the bf16 cast fused into the
    # same chain: reshape -> transpose -> convert -> reshape, no pad.  Under
    # jit this lands in one XLA fusion that reads f32 x once and writes the
    # bf16 (M, K) slab exactly once.
    xp = jnp.transpose(x.reshape(B, C, Hp, pH, Wp, pW), (0, 2, 4, 1, 3, 5))
    xp = xp.astype(jnp.bfloat16).reshape(M, K)

    wmat = weight.reshape(D, K).T.astype(jnp.bfloat16)   # (K, D), (c,kh,kw)-major
    bvec = bias.astype(jnp.float32).reshape(1, D)

    out_itemsize = jnp.dtype(out_dtype).itemsize
    # K is NOT padded to a 128 multiple: it is a full-extent block dim below,
    # so Mosaic lane-pads it in VMEM and we avoid ~8% dead activation bytes.
    tm = _pick_tm(M, K, D, out_itemsize, tm_target)
    grid = (pl.cdiv(M, tm),)   # ragged last block handled by Pallas masking

    cost = pl.CostEstimate(
        flops=2 * M * K * D,
        transcendentals=0,
        bytes_accessed=M * K * 2 + K * D * 2 + D * 4 + M * D * out_itemsize,
    )

    out = pl.pallas_call(
        _patch_proj_kernel,
        out_shape=jax.ShapeDtypeStruct((M, D), out_dtype),
        grid_spec=pltpu.PrefetchScalarGridSpec(
            num_scalar_prefetch=0,
            grid=grid,
            in_specs=[
                pl.BlockSpec((tm, K), lambda i: (i, 0)),
                # Constant index_maps: weight/bias are DMA'd once and stay
                # resident across the grid (their extra pipeline buffer is
                # already accounted for in the VMEM budget above).
                pl.BlockSpec((K, D), lambda i: (0, 0)),
                pl.BlockSpec((1, D), lambda i: (0, 0)),
            ],
            out_specs=pl.BlockSpec((tm, D), lambda i: (i, 0)),
        ),
        compiler_params=pltpu.CompilerParams(
            # "parallel" shards the M grid across v7x's two TensorCores.
            dimension_semantics=("parallel",),
            vmem_limit_bytes=_VMEM_LIMIT_BYTES,
        ),
        cost_estimate=cost,
    )(xp, wmat, bvec)

    return out.reshape(B, N, D)


if __name__ == "__main__":
    # Small, module-consistent shapes: img=16, patch=8, in_chans=4, embed_dim=32.
    B, C, H, W = 2, 4, 16, 16
    pH = pW = 8
    D = 32

    key = jax.random.PRNGKey(0)
    kx, kw = jax.random.split(key)
    x = jax.random.normal(kx, (B, C, H, W), dtype=jnp.float32)
    weight = 0.02 * jax.random.normal(kw, (D, C, pH, pW), dtype=jnp.float32)
    bias = jnp.full((D,), 0.1, dtype=jnp.float32)

    out = patch_embed_forward(x, weight, bias, (pH, pW))
    out = jax.block_until_ready(out)

    # Reference: plain-JAX f32 patch flatten + matmul + bias.
    Hp, Wp = H // pH, W // pW
    xpat = jnp.transpose(
        x.reshape(B, C, Hp, pH, Wp, pW), (0, 2, 4, 1, 3, 5)
    ).reshape(B * Hp * Wp, C * pH * pW)
    ref = (xpat @ weight.reshape(D, -1).T + bias).reshape(B, -1, D)

    assert out.shape == (B, Hp * Wp, D)
    assert out.dtype == jnp.bfloat16
    # bf16 MXU inputs + bf16 output store (f32 accumulate) vs f32 reference.
    assert jnp.allclose(out.astype(jnp.float32), ref, atol=3e-2, rtol=3e-2), \
        "mismatch vs reference"
    print("KERNEL_OK")
</pallas_src>

<mosaic_0001>
module attributes {stable_mosaic.version = 11 : i64} {
  func.func @_patch_proj_kernel(%arg0: i32, %arg1: memref<8x256xbf16, #tpu.memory_space<vmem>>, %arg2: memref<256x32xbf16, #tpu.memory_space<vmem>>, %arg3: memref<1x32xf32, #tpu.memory_space<vmem>>, %arg4: memref<8x32xbf16, #tpu.memory_space<vmem>>) attributes {dimension_semantics = [#tpu.dimension_semantics<parallel>], iteration_bounds = array<i64: 1>, scalar_prefetch = 0 : i64, scratch_operands = 0 : i64, tpu.core_type = #tpu.core_type<tc>, window_params = [{transform_indices = @transform_0, window_bounds = array<i64: 8, 256>}, {pipeline_mode = #tpu.pipeline_mode<synchronous>, transform_indices = @transform_1, window_bounds = array<i64: 256, 32>}, {pipeline_mode = #tpu.pipeline_mode<synchronous>, transform_indices = @transform_2, window_bounds = array<i64: 1, 32>}, {transform_indices = @transform_3, window_bounds = array<i64: 8, 32>}]} {
    %c0 = arith.constant 0 : index
    %c0_0 = arith.constant 0 : index
    %0 = vector.load %arg1[%c0, %c0_0] : memref<8x256xbf16, #tpu.memory_space<vmem>>, vector<8x256xbf16>
    %c0_1 = arith.constant 0 : index
    %c0_2 = arith.constant 0 : index
    %1 = vector.load %arg2[%c0_1, %c0_2] : memref<256x32xbf16, #tpu.memory_space<vmem>>, vector<256x32xbf16>
    %cst = arith.constant dense<0.000000e+00> : vector<8x32xf32>
    %2 = tpu.matmul %0, %1, %cst {dimension_numbers = #tpu.dot_dimension_numbers<[1], [0], [0], [1], [0, 0, 1, 1], [], []>} : vector<8x256xbf16>, vector<256x32xbf16>, vector<8x32xf32> -> vector<8x32xf32>
    %c0_3 = arith.constant 0 : index
    %c0_4 = arith.constant 0 : index
    %3 = vector.load %arg3[%c0_3, %c0_4] : memref<1x32xf32, #tpu.memory_space<vmem>>, vector<1x32xf32>
    %4 = vector.broadcast %3 : vector<1x32xf32> to vector<8x32xf32>
    %5 = arith.addf %2, %4 : vector<8x32xf32>
    %6 = arith.truncf %5 : vector<8x32xf32> to vector<8x32xbf16>
    %c0_5 = arith.constant 0 : index
    %c0_6 = arith.constant 0 : index
    %7 = vector.load %arg4[%c0_5, %c0_6] : memref<8x32xbf16, #tpu.memory_space<vmem>>, vector<8x32xbf16>
    tpu.vector_store %arg4[%c0_5, %c0_6], %6 {strides = array<i32>} : memref<8x32xbf16, #tpu.memory_space<vmem>>, vector<8x32xbf16>,
    return
  }
  func.func @transform_0(%arg0: i32) -> (i32, i32) {
    %c0_i32 = arith.constant 0 : i32
    %c0_i32_0 = arith.constant 0 : i32
    return %arg0, %c0_i32 : i32, i32
  }
  func.func @transform_1(%arg0: i32) -> (i32, i32) {
    %c0_i32 = arith.constant 0 : i32
    %c0_i32_0 = arith.constant 0 : i32
    %c0_i32_1 = arith.constant 0 : i32
    return %c0_i32, %c0_i32_0 : i32, i32
  }
  func.func @transform_2(%arg0: i32) -> (i32, i32) {
    %c0_i32 = arith.constant 0 : i32
    %c0_i32_0 = arith.constant 0 : i32
    %c0_i32_1 = arith.constant 0 : i32
    return %c0_i32, %c0_i32_0 : i32, i32
  }
  func.func @transform_3(%arg0: i32) -> (i32, i32) {
    %c0_i32 = arith.constant 0 : i32
    %c0_i32_0 = arith.constant 0 : i32
    return %arg0, %c0_i32 : i32, i32
  }
}

</mosaic_0001>

<bundles_post_ra>
// kernel: patch_embed_forward.1
= control target key start
LH: loop header
LB: loop body
LE: loop exit
PB: predicated region body
PF: predicated region fallthrough
CT: control target
= control target key end

     0   :  { %s376_s0 = inlined_call_operand.vmem [shape: bf16[8,256], index: 0, kind: input, shape index: {}]   ;;  %s377_s1 = inlined_call_operand.vmem [shape: bf16[256,32], index: 1, kind: input, shape index: {}]   ;;  %s378_s2 = inlined_call_operand.vmem [shape: f32[1,32], index: 2, kind: input, shape index: {}]   ;;  %s379_s3 = inlined_call_operand.hbm [shape: bf16[8,32], index: 3, kind: output, shape index: {}]  }
   0x1   :  { %v258_v0 = vld [vmem:[%s377_s1 + $0x78] sm:$0xff]   ;;  %v260_v2 = vld [vmem:[%s377_s1 + $0x70] sm:$0xff]   ;;  %v262_v4 = vld [vmem:[%s377_s1 + $0x68] sm:$0xff]  }
   0x2   :  { %v259_v1 = vld [vmem:[%s377_s1 + $0x38] sm:$0xff]   ;;  %235 = vmatprep.subr.bf16.mxu0 %v258_v0  ;;  %v261_v3 = vld [vmem:[%s377_s1 + $0x30] sm:$0xff]   ;;  %v263_v5 = vld [vmem:[%s377_s1 + $0x28] sm:$0xff]  }
   0x3   :  { %236 = vmatpush3.bf16.msra.mxu0 %v259_v1  ;;  %v264_v6 = vld [vmem:[%s377_s1 + $0x60] sm:$0xff]   ;;  %v266_v8 = vld [vmem:[%s377_s1 + $0x58] sm:$0xff]   ;;  %v268_v10 = vld [vmem:[%s377_s1 + $0x50] sm:$0xff]  }
   0x4   :  { %237 = vmatprep.subr.bf16.mxu0 %v260_v2  ;;  %v265_v7 = vld [vmem:[%s377_s1 + $0x20] sm:$0xff]   ;;  %v267_v9 = vld [vmem:[%s377_s1 + $0x18] sm:$0xff]  }
   0x5   :  { %v16_v11 = vld [vmem:[%s376_s0] sm:$0xff] }
   0x7   :  { %238 = vmatpush3.bf16.msra.mxu0 %v261_v3 }
   0x8   :  { %239 = vmatprep.subr.bf16.mxu0 %v262_v4 }
   0xb   :  { %240 = vmatpush3.bf16.msra.mxu0 %v263_v5 }
   0xc   :  { %241 = vmatprep.subr.bf16.mxu0 %v264_v6 }
   0xf   :  { %242 = vmatpush3.bf16.msra.mxu0 %v265_v7 }
  0x10   :  { %243 = vmatprep.subr.bf16.mxu0 %v266_v8 }
  0x11   :  { %8 = vsyncpa [#allocation3], 0  ;;  %v218_v12 = vcombine.high %v16_v11, %v16_v11  ;;  %v269_v13 = vld [vmem:[%s377_s1 + $0x10] sm:$0xff]   ;;  %v270_v14 = vld [vmem:[%s377_s1 + $0x48] sm:$0xff]   ;;  %v217_v18 = vcombine.low %v16_v11, %v16_v11  ;;  %s298_s20 = smov [#allocation2]   ;;  %vm200_vm0 = vcmask 257024  }
  0x12   :  { %v271_v15 = vld [vmem:[%s377_s1 + $0x8] sm:$0xff]   ;;  %v272_v16 = vld [vmem:[%s377_s1 + $0x40] sm:$0xff]   ;;  %s208_s21 = sshll.u32 %s298_s20, 4  ;;  %s209_s21 = int_to_ptr.vmem [resolvable:$true] %s208_s21 }
  0x13   :  { %244 = vmatpush3.bf16.msra.mxu0 %v267_v9  ;;  %191 = vmatprep.mubr.bf16.mxu0 %v218_v12  ;;  %v273_v17 = vld [vmem:[%s377_s1] sm:$0xff]   ;;  %s276_s1 = scalar_lea.vmem %s209_s21, 64  ;;  %p281_p1 = scmp.lt.s32.totalorder %s209_s21, %s209_s21 }
  0x14   :  { %245 = vmatprep.subr.bf16.mxu0 %v268_v10  ;;  %v216_v20 = vld [vmem:[%s378_s2] ss:$0 sm:$0xff]  ;;  %p277_p0 = scmp.ne.s32.totalorder %s209_s21, %s276_s1  ;;  %p282_p2 = scmp.lt.s32.totalorder %s276_s1, %s276_s1 }
  0x16   :  { %p283_p3 = por %p282_p2, %p281_p1 }
  0x17   :  { %246 = vmatpush3.bf16.msra.mxu0 %v269_v13 }
  0x18   :  { %247 = vmatprep.subr.bf16.mxu0 %v270_v14  ;;  %p284_p4 = pnand %p283_p3, %p277_p0 }
  0x1b   :  { %248 = vmatpush3.bf16.msra.mxu0 %v271_v15 }
  0x1c   :  { %249 = vmatprep.subr.bf16.mxu0 %v272_v16 }
  0x1f   :  { %250 = vmatpush3.bf16.msra.mxu0 %v273_v17 }
  0x22   :  { %192 = vmatmul.mubr.bf16.vlgmr.msra.gmra.mxu0 %v217_v18 }
  0xe2   :  { %v251_v19 = vpop.f32.mrf.mxu0 }
  0xe4   :  { %v252_v21 = vpop.f32.mrf.mxu0 }
  0xe5   :  { %v253_v22 = vadd.f32 %v252_v21, %v251_v19 }
  0xe6   :  { %v254_v23 = vpop.f32.mrf.mxu0 }
  0xe7   :  { %v194_v24 = vadd.f32 %v253_v22, %v216_v20 }
  0xe8   :  { %v255_v25 = vpop.f32.mrf.mxu0 }
  0xe9   :  { %v199_v26 = vpack.c.bf16 %v194_v24, %v194_v24 }
  0xeb   :  { %201 = vst.msk [vmem:[#allocation2] sm:$0xf] %vm200_vm0, %v199_v26 }
  0xec   :  { %287 = shalt.err (!%p284_p4)
}
  0xed   :  { %211 = dma.vmem_to_hbm [thread:$0]  %s209_s21, 64, %s379_s3, [#allocation3]  }
  0xee   :  { %296 = dma.done.wait [#allocation3], 64  }
  0xef   :  { %297 = vsyncadd [#allocation3], 4294967232 }
  0xf0   :  { %215 = vsyncpa [#allocation3], 1 }

</bundles_post_ra>
